<compile_context>
chip_gen: v6e
topology: v6e:2x2x1
jax: 0.10.0
libtpu: 0.0.40
codegen_flags: <defaults>
</compile_context>

<pallas_src>
import functools
import math

import jax
import jax.numpy as jnp
from jax import lax
from jax.experimental import pallas as pl
from jax.experimental.pallas import tpu as pltpu

PATCH = 4              # patch size of the (conv-as-matmul) patch embedding
DIM = 64               # transformer hidden width
LANE = 128             # TPU lane width
SUBLANE = 8
TILE_NC_MAX = 2048     # content-token rows per grid step
TILE_NS_MAX = 512      # style-token (KV) columns per inner (flash) step
VMEM_LIMIT = 48 * 1024 * 1024


def _cdiv(a, b):
    return (a + b - 1) // b


def _round_up(x, m):
    return _cdiv(x, m) * m


def _balanced_tile(n, max_tile, align):
    """Near-equal tiles: round_up(cdiv(n, cdiv(n, max_tile)), align)."""
    return _round_up(_cdiv(n, _cdiv(n, max_tile)), align)


# ----------------------------------------------------------------------------------
# Pallas kernel 1 (gridded over style-token chunks, one-time):
#   patch-embed style -> pre-transposed Kq (Wq & 1/sqrt(D) folded in) and V, bf16.
# ----------------------------------------------------------------------------------
def _style_kv_kernel(sp_ref, we_ref, be_ref, wkqt_ref, wv_ref, kqt_ref, v_ref):
    s_tok = jnp.dot(sp_ref[...], we_ref[...],
                    preferred_element_type=jnp.float32) + be_ref[...]
    s_bf = s_tok.astype(jnp.bfloat16)
    # kqt[a, n] = sum_d wkqt[a, d] * s_tok[n, d]  ==  (Wq_s @ Wk^T @ s_tok^T)[a, n]
    kqt_ref[...] = lax.dot_general(
        wkqt_ref[...], s_bf, (((1,), (1,)), ((), ())),
        preferred_element_type=jnp.float32).astype(jnp.bfloat16)
    v_ref[...] = jnp.dot(s_bf, wv_ref[...],
                         preferred_element_type=jnp.float32).astype(jnp.bfloat16)


# ----------------------------------------------------------------------------------
# Pallas kernel 2 (grid = content tiles x KV chunks):
#   embed -> flash-style cross-attention (online softmax) -> merged decode.
# ----------------------------------------------------------------------------------
def _unist_kernel(cp_ref, kqt_ref, v_ref,          # content patches, Kq^T / V chunks
                  we_ref, be_ref,                  # patch embedding  [Pd, D], [1, D]
                  wdod_ref, bd_ref,                # [Wdec; Wo@Wdec] [2D, Pd], [1, Pd]
                  out_ref,                         # bf16 output [tile_nc, Pd]
                  cbuf, m_sc, l_sc, acc_sc,        # scratch
                  *, ns, tile_ns):
    kj = pl.program_id(1)

    @pl.when(kj == 0)
    def _init():
        # Embed this content tile once, stash bf16 copy in cols [0, DIM) of cbuf.
        c_tok = jnp.dot(cp_ref[...], we_ref[...],
                        preferred_element_type=jnp.float32) + be_ref[...]
        cbuf[:, :DIM] = c_tok.astype(jnp.bfloat16)
        m_sc[...] = jnp.full_like(m_sc, -jnp.inf)
        l_sc[...] = jnp.zeros_like(l_sc)
        acc_sc[...] = jnp.zeros_like(acc_sc)

    # Logits for this KV chunk (Wq already folded into Kq): [tile_nc, tile_ns].
    logits = jnp.dot(cbuf[:, :DIM], kqt_ref[...],
                     preferred_element_type=jnp.float32)
    if ns % tile_ns != 0:
        # Mask padded style-token columns BEFORE max/exp.
        col = lax.broadcasted_iota(jnp.int32, (1, tile_ns), 1) + kj * tile_ns
        logits = logits + jnp.where(col < ns, 0.0, -1e30)

    # Online softmax accumulation (normalize after the f32-accumulated attn @ V).
    m_new = jnp.maximum(m_sc[...], jnp.max(logits, axis=-1, keepdims=True))
    alpha = jnp.exp(m_sc[...] - m_new)
    p = jnp.exp(logits - m_new)
    l_sc[...] = alpha * l_sc[...] + jnp.sum(p, axis=-1, keepdims=True)
    acc_sc[...] = alpha * acc_sc[...] + jnp.dot(
        p.astype(jnp.bfloat16), v_ref[...], preferred_element_type=jnp.float32)
    m_sc[...] = m_new

    @pl.when(kj == pl.num_programs(1) - 1)
    def _finalize():
        inv_l = pl.reciprocal(l_sc[...], approx=True)
        cbuf[:, DIM:] = (acc_sc[...] * inv_l).astype(jnp.bfloat16)
        # Single K=128 decode matmul: [c_tok | ctx] @ [Wdec; Wo@Wdec] + b.
        out_ref[...] = (jnp.dot(cbuf[...], wdod_ref[...],
                                preferred_element_type=jnp.float32)
                        + bd_ref[...]).astype(out_ref.dtype)


# ----------------------------------------------------------------------------------
# Glue: NCHW <-> patch-token matrices (plain JAX, layout plumbing only)
# ----------------------------------------------------------------------------------
def _to_patches(x, p):
    n, c, h, w = x.shape
    x = x.reshape(n, c, h // p, p, w // p, p)
    x = x.transpose(0, 2, 4, 1, 3, 5)               # n, gh, gw, c, p, p
    return x.reshape(n * (h // p) * (w // p), c * p * p)


def _from_patches(tok, n, c, h, w, p):
    x = tok.reshape(n, h // p, w // p, c, p, p)
    x = x.transpose(0, 3, 1, 4, 2, 5)               # n, c, gh, p, gw, p
    return x.reshape(n, c, h, w)


def _pad_cols(x, cols):
    return jnp.pad(x, ((0, 0), (0, cols - x.shape[1])))


def _pad_rows(x, rows):
    return jnp.pad(x, ((0, rows - x.shape[0]), (0, 0)))


# ----------------------------------------------------------------------------------
# Deterministic parameter init (no checkpoint load — synthetic weights)
# ----------------------------------------------------------------------------------
def init_params(key, channels=3, patch=PATCH, dim=DIM):
    patch_dim = channels * patch * patch
    ks = jax.random.split(key, 8)

    def lin(k, fan_in, shape):
        return jax.random.normal(k, shape, jnp.float32) / math.sqrt(fan_in)

    w_embed = lin(ks[0], patch_dim, (patch_dim, dim))
    b_embed = jnp.zeros((1, dim), jnp.float32)
    w_q = lin(ks[1], dim, (dim, dim))
    w_k = lin(ks[2], dim, (dim, dim))
    w_v = lin(ks[3], dim, (dim, dim))
    w_o = lin(ks[4], dim, (dim, dim))
    w_dec = lin(ks[5], dim, (dim, patch_dim))
    b_dec = jnp.zeros((1, patch_dim), jnp.float32)
    return (w_embed, b_embed, w_q, w_k, w_v, w_o, w_dec, b_dec)


def prepare_params(params, channels=3, patch=PATCH, dim=DIM):
    """Fold / pad / cast logical weights into kernel-ready form (done once)."""
    (w_embed, b_embed, w_q, w_k, w_v, w_o, w_dec, b_dec) = params
    patch_dim = channels * patch * patch
    pd_pad = _round_up(patch_dim, LANE)

    we = jnp.pad(w_embed, ((0, pd_pad - patch_dim), (0, 0))).astype(jnp.bfloat16)
    be = b_embed.astype(jnp.float32)
    # Fold 1/sqrt(D) and Wq into the style-key projection:
    #   logits = (c @ Wq_s) @ (s @ Wk)^T = c @ [Wq_s @ Wk^T] @ s^T
    wkqt = ((w_q * (1.0 / math.sqrt(dim))) @ w_k.T).astype(jnp.bfloat16)
    wv = w_v.astype(jnp.bfloat16)
    # Merge decode: out = c@Wdec + (ctx@Wo)@Wdec + b = [c|ctx] @ [Wdec; Wo@Wdec] + b
    wd_pad = _pad_cols(w_dec, pd_pad)
    wdod = jnp.concatenate([wd_pad, w_o @ wd_pad], axis=0).astype(jnp.bfloat16)
    bd = _pad_cols(b_dec, pd_pad).astype(jnp.float32)
    return dict(we=we, be=be, wkqt=wkqt, wv=wv, wdod=wdod, bd=bd,
                patch_dim=patch_dim, pd_pad=pd_pad)


# ----------------------------------------------------------------------------------
# Forward wrapper (mirrors video_Style_transfer.forward signature)
# ----------------------------------------------------------------------------------
def video_style_transfer(content_frames, style_images, params,
                         id_loss="transfer", tab=None):
    # TODO(synk): UniST's `id_loss`/`tab` branches and the full multi-head/LayerNorm
    # Transformer internals are not specified; only the main 'transfer' path of a
    # single-head cross-attention variant is implemented here.
    T, C, H, W = content_frames.shape
    pd = params["patch_dim"]
    pd_pad = params["pd_pad"]

    cp = _to_patches(content_frames.astype(jnp.float32), PATCH)   # [Nc, C*p*p]
    sp = _to_patches(style_images.astype(jnp.float32), PATCH)     # [Ns, C*p*p]
    nc, ns = cp.shape[0], sp.shape[0]

    # Lane-dense (128-wide) bf16 token matrices.
    cp = _pad_cols(cp, pd_pad).astype(jnp.bfloat16)
    sp = _pad_cols(sp, pd_pad).astype(jnp.bfloat16)

    # Balanced, VMEM-bounded tiling of both token axes.
    tile_nc = _balanced_tile(nc, TILE_NC_MAX, SUBLANE)
    nc_pad = _round_up(nc, tile_nc)
    tile_ns = _balanced_tile(ns, TILE_NS_MAX, LANE)
    ns_pad = _round_up(ns, tile_ns)

    cp = _pad_rows(cp, nc_pad)
    sp = _pad_rows(sp, ns_pad)

    # ---- one-time style stream: pre-transposed Kq [DIM, Ns] and V [Ns, DIM] ------
    kqt, v = pl.pallas_call(
        _style_kv_kernel,
        out_shape=(jax.ShapeDtypeStruct((DIM, ns_pad), jnp.bfloat16),
                   jax.ShapeDtypeStruct((ns_pad, DIM), jnp.bfloat16)),
        grid=(ns_pad // tile_ns,),
        in_specs=[
            pl.BlockSpec((tile_ns, pd_pad), lambda i: (i, 0)),   # style patches
            pl.BlockSpec((pd_pad, DIM), lambda i: (0, 0)),       # w_embed
            pl.BlockSpec((1, DIM), lambda i: (0, 0)),            # b_embed
            pl.BlockSpec((DIM, DIM), lambda i: (0, 0)),          # Wq_s @ Wk^T
            pl.BlockSpec((DIM, DIM), lambda i: (0, 0)),          # W_v
        ],
        out_specs=(pl.BlockSpec((DIM, tile_ns), lambda i: (0, i)),
                   pl.BlockSpec((tile_ns, DIM), lambda i: (i, 0))),
        compiler_params=pltpu.CompilerParams(
            dimension_semantics=("parallel",),
            vmem_limit_bytes=VMEM_LIMIT),
    )(sp, params["we"], params["be"], params["wkqt"], params["wv"])

    # ---- main kernel: grid = (content tiles, KV chunks) --------------------------
    kern = functools.partial(_unist_kernel, ns=ns, tile_ns=tile_ns)
    out_patches = pl.pallas_call(
        kern,
        out_shape=jax.ShapeDtypeStruct((nc_pad, pd_pad), jnp.bfloat16),
        grid=(nc_pad // tile_nc, ns_pad // tile_ns),
        in_specs=[
            pl.BlockSpec((tile_nc, pd_pad), lambda i, j: (i, 0)),   # content patches
            pl.BlockSpec((DIM, tile_ns), lambda i, j: (0, j)),      # Kq^T chunk
            pl.BlockSpec((tile_ns, DIM), lambda i, j: (j, 0)),      # V chunk
            pl.BlockSpec((pd_pad, DIM), lambda i, j: (0, 0)),       # w_embed
            pl.BlockSpec((1, DIM), lambda i, j: (0, 0)),            # b_embed
            pl.BlockSpec((2 * DIM, pd_pad), lambda i, j: (0, 0)),   # [Wdec; Wo@Wdec]
            pl.BlockSpec((1, pd_pad), lambda i, j: (0, 0)),         # b_dec
        ],
        out_specs=pl.BlockSpec((tile_nc, pd_pad), lambda i, j: (i, 0)),
        scratch_shapes=[
            pltpu.VMEM((tile_nc, 2 * DIM), jnp.bfloat16),   # [c_tok | ctx] bf16
            pltpu.VMEM((tile_nc, 1), jnp.float32),          # running max
            pltpu.VMEM((tile_nc, 1), jnp.float32),          # running sum
            pltpu.VMEM((tile_nc, DIM), jnp.float32),        # unnormalized ctx acc
        ],
        compiler_params=pltpu.CompilerParams(
            dimension_semantics=("parallel", "arbitrary"),
            vmem_limit_bytes=VMEM_LIMIT),
    )(cp, kqt, v, params["we"], params["be"], params["wdod"], params["bd"])

    out_patches = out_patches[:nc, :pd].astype(jnp.float32)
    return _from_patches(out_patches, T, C, H, W, PATCH)


if __name__ == "__main__":
    key = jax.random.PRNGKey(0)
    k_c, k_s, k_p = jax.random.split(key, 3)

    # Small shapes consistent with the module: a few NCHW content frames + 1 style image.
    content_frames = jax.random.normal(k_c, (2, 3, 16, 16), jnp.float32)
    style_images = jax.random.normal(k_s, (1, 3, 16, 16), jnp.float32)

    raw_params = init_params(k_p, channels=3)
    params = prepare_params(raw_params, channels=3)

    out = video_style_transfer(content_frames, style_images, params,
                               id_loss="transfer", tab=None)
    out = jax.block_until_ready(out)

    assert out.shape == content_frames.shape, out.shape
    assert bool(jnp.all(jnp.isfinite(out)))
    print("KERNEL_OK")
</pallas_src>

<mosaic_0001>
module attributes {stable_mosaic.version = 11 : i64} {
  func.func @_style_kv_kernel(%arg0: i32, %arg1: memref<128x128xbf16, #tpu.memory_space<vmem>>, %arg2: memref<128x64xbf16, #tpu.memory_space<vmem>>, %arg3: memref<1x64xf32, #tpu.memory_space<vmem>>, %arg4: memref<64x64xbf16, #tpu.memory_space<vmem>>, %arg5: memref<64x64xbf16, #tpu.memory_space<vmem>>, %arg6: memref<64x128xbf16, #tpu.memory_space<vmem>>, %arg7: memref<128x64xbf16, #tpu.memory_space<vmem>>) attributes {dimension_semantics = [#tpu.dimension_semantics<parallel>], iteration_bounds = array<i64: 1>, scalar_prefetch = 0 : i64, scratch_operands = 0 : i64, tpu.core_type = #tpu.core_type<tc>, window_params = [{transform_indices = @transform_0, window_bounds = array<i64: 128, 128>}, {pipeline_mode = #tpu.pipeline_mode<synchronous>, transform_indices = @transform_1, window_bounds = array<i64: 128, 64>}, {pipeline_mode = #tpu.pipeline_mode<synchronous>, transform_indices = @transform_2, window_bounds = array<i64: 1, 64>}, {pipeline_mode = #tpu.pipeline_mode<synchronous>, transform_indices = @transform_3, window_bounds = array<i64: 64, 64>}, {pipeline_mode = #tpu.pipeline_mode<synchronous>, transform_indices = @transform_4, window_bounds = array<i64: 64, 64>}, {transform_indices = @transform_5, window_bounds = array<i64: 64, 128>}, {transform_indices = @transform_6, window_bounds = array<i64: 128, 64>}]} {
    %c0 = arith.constant 0 : index
    %c0_0 = arith.constant 0 : index
    %0 = vector.load %arg1[%c0, %c0_0] : memref<128x128xbf16, #tpu.memory_space<vmem>>, vector<128x128xbf16>
    %c0_1 = arith.constant 0 : index
    %c0_2 = arith.constant 0 : index
    %1 = vector.load %arg2[%c0_1, %c0_2] : memref<128x64xbf16, #tpu.memory_space<vmem>>, vector<128x64xbf16>
    %cst = arith.constant dense<0.000000e+00> : vector<128x64xf32>
    %2 = tpu.matmul %0, %1, %cst {dimension_numbers = #tpu.dot_dimension_numbers<[1], [0], [0], [1], [0, 0, 1, 1], [], []>} : vector<128x128xbf16>, vector<128x64xbf16>, vector<128x64xf32> -> vector<128x64xf32>
    %c0_3 = arith.constant 0 : index
    %c0_4 = arith.constant 0 : index
    %3 = vector.load %arg3[%c0_3, %c0_4] : memref<1x64xf32, #tpu.memory_space<vmem>>, vector<1x64xf32>
    %4 = vector.broadcast %3 : vector<1x64xf32> to vector<128x64xf32>
    %5 = arith.addf %2, %4 : vector<128x64xf32>
    %6 = arith.truncf %5 : vector<128x64xf32> to vector<128x64xbf16>
    %c0_5 = arith.constant 0 : index
    %c0_6 = arith.constant 0 : index
    %7 = vector.load %arg4[%c0_5, %c0_6] : memref<64x64xbf16, #tpu.memory_space<vmem>>, vector<64x64xbf16>
    %cst_7 = arith.constant dense<0.000000e+00> : vector<64x128xf32>
    %8 = tpu.matmul %7, %6, %cst_7 {dimension_numbers = #tpu.dot_dimension_numbers<[1], [1], [0], [0], [0, 0, 1, 0], [], []>} : vector<64x64xbf16>, vector<128x64xbf16>, vector<64x128xf32> -> vector<64x128xf32>
    %9 = arith.truncf %8 : vector<64x128xf32> to vector<64x128xbf16>
    %c0_8 = arith.constant 0 : index
    %c0_9 = arith.constant 0 : index
    %10 = vector.load %arg6[%c0_8, %c0_9] : memref<64x128xbf16, #tpu.memory_space<vmem>>, vector<64x128xbf16>
    tpu.vector_store %arg6[%c0_8, %c0_9], %9 {strides = array<i32>} : memref<64x128xbf16, #tpu.memory_space<vmem>>, vector<64x128xbf16>,
    %c0_10 = arith.constant 0 : index
    %c0_11 = arith.constant 0 : index
    %11 = vector.load %arg5[%c0_10, %c0_11] : memref<64x64xbf16, #tpu.memory_space<vmem>>, vector<64x64xbf16>
    %cst_12 = arith.constant dense<0.000000e+00> : vector<128x64xf32>
    %12 = tpu.matmul %6, %11, %cst_12 {dimension_numbers = #tpu.dot_dimension_numbers<[1], [0], [0], [1], [0, 0, 1, 1], [], []>} : vector<128x64xbf16>, vector<64x64xbf16>, vector<128x64xf32> -> vector<128x64xf32>
    %13 = arith.truncf %12 : vector<128x64xf32> to vector<128x64xbf16>
    %c0_13 = arith.constant 0 : index
    %c0_14 = arith.constant 0 : index
    %14 = vector.load %arg7[%c0_13, %c0_14] : memref<128x64xbf16, #tpu.memory_space<vmem>>, vector<128x64xbf16>
    tpu.vector_store %arg7[%c0_13, %c0_14], %13 {strides = array<i32>} : memref<128x64xbf16, #tpu.memory_space<vmem>>, vector<128x64xbf16>,
    return
  }
  func.func @transform_0(%arg0: i32) -> (i32, i32) {
    %c0_i32 = arith.constant 0 : i32
    %c0_i32_0 = arith.constant 0 : i32
    return %arg0, %c0_i32 : i32, i32
  }
  func.func @transform_1(%arg0: i32) -> (i32, i32) {
    %c0_i32 = arith.constant 0 : i32
    %c0_i32_0 = arith.constant 0 : i32
    %c0_i32_1 = arith.constant 0 : i32
    return %c0_i32, %c0_i32_0 : i32, i32
  }
  func.func @transform_2(%arg0: i32) -> (i32, i32) {
    %c0_i32 = arith.constant 0 : i32
    %c0_i32_0 = arith.constant 0 : i32
    %c0_i32_1 = arith.constant 0 : i32
    return %c0_i32, %c0_i32_0 : i32, i32
  }
  func.func @transform_3(%arg0: i32) -> (i32, i32) {
    %c0_i32 = arith.constant 0 : i32
    %c0_i32_0 = arith.constant 0 : i32
    %c0_i32_1 = arith.constant 0 : i32
    return %c0_i32, %c0_i32_0 : i32, i32
  }
  func.func @transform_4(%arg0: i32) -> (i32, i32) {
    %c0_i32 = arith.constant 0 : i32
    %c0_i32_0 = arith.constant 0 : i32
    %c0_i32_1 = arith.constant 0 : i32
    return %c0_i32, %c0_i32_0 : i32, i32
  }
  func.func @transform_5(%arg0: i32) -> (i32, i32) {
    %c0_i32 = arith.constant 0 : i32
    %c0_i32_0 = arith.constant 0 : i32
    return %c0_i32, %arg0 : i32, i32
  }
  func.func @transform_6(%arg0: i32) -> (i32, i32) {
    %c0_i32 = arith.constant 0 : i32
    %c0_i32_0 = arith.constant 0 : i32
    return %arg0, %c0_i32 : i32, i32
  }
}

</mosaic_0001>

<bundles_post_ra>
// kernel: tpu_custom_call.1
= control target key start
LH: loop header
LB: loop body
LE: loop exit
PB: predicated region body
PF: predicated region fallthrough
CT: control target
= control target key end

     0   :  { %12 = vsyncpa [#allocation3], 0  ;;  %s1225_s0 = inlined_call_operand.vmem [shape: bf16[128,128], index: 0, kind: input, shape index: {}]   ;;  %s1226_s1 = inlined_call_operand.vmem [shape: bf16[128,64], index: 1, kind: input, shape index: {}]   ;;  %s1227_s2 = inlined_call_operand.vmem [shape: f32[1,64], index: 2, kind: input, shape index: {}]   ;;  %s1228_s3 = inlined_call_operand.vmem [shape: bf16[64,64], index: 3, kind: input, shape index: {}]   ;;  %s1229_s4 = inlined_call_operand.hbm [shape: bf16[64,64], index: 4, kind: input, shape index: {}]   ;;  %s1230_s5 = inlined_call_operand.hbm [shape: bf16[64,128], index: 5, kind: output, shape index: {0}]   ;;  %s1231_s6 = inlined_call_operand.vmem [shape: bf16[128,64], index: 6, kind: output, shape index: {1}]  }
   0x1   :  { %13 = vsyncpa [#allocation4], 0  ;;  %s995_s21 = smov [#allocation2]  }
   0x2   :  { %s27_s22 = sshll.u32 %s995_s21, 4  ;;  %s28_s22 = int_to_ptr.vmem [resolvable:$true] %s27_s22 }
   0x3   :  { %s959_s23 = scalar_lea.vmem %s28_s22, 512  ;;  %p964_p1 = scmp.lt.s32.totalorder %s28_s22, %s28_s22 }
   0x4   :  { %p960_p0 = scmp.ne.s32.totalorder %s28_s22, %s959_s23  ;;  %p965_p2 = scmp.lt.s32.totalorder %s959_s23, %s959_s23 }
   0x6   :  { %p966_p3 = por %p965_p2, %p964_p1 }
   0x8   :  { %p967_p4 = pnand %p966_p3, %p960_p0 }
   0xa   :  { %970 = shalt.err (!%p967_p4)
}
   0xb   :  { %s996_s24 = smov 64   ;;  %s997_s25 = smov 4  }
   0xc   :  { %33 = dma.hbm_to_vmem [thread:$0]  %s1229_s4, 512, %s28_s22, [#allocation3], %s996_s24, %s996_s24, %s997_s25  }
   0xd   :  { %991 = dma.done.wait [#allocation3], 512  }
   0xe   :  { %992 = vsyncadd [#allocation3], 4294966784  ;;  %v927_v0 = vld [vmem:[%s1226_s1 + $0x38] sm:$0xff]   ;;  %v928_v1 = vld [vmem:[%s1226_s1 + $0x30] sm:$0xff]   ;;  %vm306_vm0 = vcmask 523264   ;;  %vm641_vm1 = vcmask 519168  }
   0xf   :  { %827 = vmatprep.subr.bf16.mxu0 %v927_v0  ;;  %v929_v2 = vld [vmem:[%s1226_s1 + $0x28] sm:$0xff]   ;;  %v930_v3 = vld [vmem:[%s1226_s1 + $0x20] sm:$0xff]   ;;  %v931_v5 = vld [vmem:[%s1226_s1 + $0x18] sm:$0xff]   ;;  %s998_s16 = smov [#allocation5]  }
  0x10   :  { %828 = vmatpush3.bf16.msra.mxu0 %v927_v0  ;;  %v935_v4 = vld [vmem:[%s1225_s0] sm:$0xff]   ;;  %v932_v6 = vld [vmem:[%s1226_s1 + $0x10] sm:$0xff]   ;;  %v933_v7 = vld [vmem:[%s1226_s1 + $0x8] sm:$0xff]   ;;  %s663_s17 = sshll.u32 %s998_s16, 4  ;;  %s664_s17 = int_to_ptr.vmem [resolvable:$true] %s663_s17 }
  0x11   :  { %829 = vmatprep.subr.bf16.mxu0 %v928_v1  ;;  %843 = vmatprep.mubr.bf16.mxu0 %v935_v4  ;;  %v934_v8 = vld [vmem:[%s1226_s1] sm:$0xff]   ;;  %v1067_v9 = vld [vmem:[#allocation2 + $0x18] sm:$0xff]   ;;  %v936_v10 = vld [vmem:[%s1225_s0 + $0x8] sm:$0xff]   ;;  %s971_s18 = scalar_lea.vmem %s664_s17, 512  ;;  %p976_p6 = scmp.lt.s32.totalorder %s664_s17, %s664_s17 }
  0x12   :  { %v937_v11 = vld [vmem:[%s1225_s0 + $0x10] sm:$0xff]   ;;  %v938_v12 = vld [vmem:[%s1225_s0 + $0x18] sm:$0xff]   ;;  %v939_v13 = vld [vmem:[%s1225_s0 + $0x20] sm:$0xff]   ;;  %p972_p5 = scmp.ne.s32.totalorder %s664_s17, %s971_s18  ;;  %p977_p7 = scmp.lt.s32.totalorder %s971_s18, %s971_s18 }
  0x13   :  { %v940_v14 = vld [vmem:[%s1225_s0 + $0x28] sm:$0xff]   ;;  %v941_v15 = vld [vmem:[%s1225_s0 + $0x30] sm:$0xff]   ;;  %v942_v16 = vld [vmem:[%s1225_s0 + $0x38] sm:$0xff]  }
  0x14   :  { %830 = vmatpush3.bf16.msra.mxu0 %v928_v1  ;;  %v1092_v17 = vld [vmem:[#allocation2 + $0x10] sm:$0xff]   ;;  %v1096_v18 = vld [vmem:[#allocation2 + $0x8] sm:$0xff]   ;;  %v1100_v19 = vld [vmem:[#allocation2] sm:$0xff]   ;;  %p978_p8 = por %p977_p7, %p976_p6 }
  0x15   :  { %831 = vmatprep.subr.bf16.mxu0 %v929_v2  ;;  %v947_v20 = vld [vmem:[%s1228_s3] sm:$0xff]  }
  0x16   :  { %875 = vmatprep.mubr.msk.bf16.mxu1 %vm306_vm0, %v947_v20  ;;  %v679_v24 = vld [vmem:[%s1227_s2] ss:$0 sm:$0xff]  ;;  %p979_p9 = pnand %p978_p8, %p972_p5 }
  0x18   :  { %832 = vmatpush3.bf16.msra.mxu0 %v929_v2 }
  0x19   :  { %833 = vmatprep.subr.bf16.mxu0 %v930_v3 }
  0x1c   :  { %834 = vmatpush3.bf16.msra.mxu0 %v930_v3 }
  0x1d   :  { %835 = vmatprep.subr.bf16.mxu0 %v931_v5 }
  0x20   :  { %836 = vmatpush3.bf16.msra.mxu0 %v931_v5 }
  0x21   :  { %837 = vmatprep.subr.bf16.mxu0 %v932_v6 }
  0x24   :  { %838 = vmatpush3.bf16.msra.mxu0 %v932_v6  ;;  %v948_v6 = vld [vmem:[%s1228_s3 + $0x8] sm:$0xff]  }
  0x25   :  { %839 = vmatprep.subr.bf16.mxu0 %v933_v7 }
  0x28   :  { %840 = vmatpush3.bf16.msra.mxu0 %v933_v7  ;;  %v949_v7 = vld [vmem:[%s1228_s3 + $0x10] sm:$0xff]  }
  0x29   :  { %841 = vmatprep.subr.bf16.mxu0 %v934_v8 }
  0x2c   :  { %842 = vmatpush3.bf16.msra.mxu0 %v934_v8  ;;  %v950_v8 = vld [vmem:[%s1228_s3 + $0x18] sm:$0xff]  }
  0x2d   :  { %883 = vmatprep.subr.bf16.mxu0 %v1067_v9 }
  0x2f   :  { %844 = vmatmul.mubr.bf16.vlgmr.msra.gmra.mxu0 %v936_v10 }
  0x30   :  { %847 = vmatprep.mubr.bf16.mxu0 %v937_v11  ;;  %884 = vmatpush3.bf16.msra.mxu0 %v1067_v9 }
  0x31   :  { %885 = vmatprep.subr.bf16.mxu0 %v1092_v17 }
  0x34   :  { %886 = vmatpush3.bf16.msra.mxu0 %v1092_v17 }
  0x35   :  { %887 = vmatprep.subr.bf16.mxu0 %v1096_v18 }
  0x37   :  { %848 = vmatmul.mubr.bf16.gmra.mxu0 %v938_v12 }
  0x38   :  { %851 = vmatprep.mubr.bf16.mxu0 %v939_v13  ;;  %888 = vmatpush3.bf16.msra.mxu0 %v1096_v18 }
  0x39   :  { %889 = vmatprep.subr.bf16.mxu0 %v1100_v19 }
  0x3c   :  { %890 = vmatpush3.bf16.msra.mxu0 %v1100_v19 }
  0x3f   :  { %852 = vmatmul.mubr.bf16.gmra.mxu0 %v940_v14 }
  0x40   :  { %855 = vmatprep.mubr.bf16.mxu0 %v941_v15 }
  0x47   :  { %856 = vmatmul.mubr.bf16.gmra.mxu0 %v942_v16 }
  0xef   :  { %v845_v21 = vpop.f32.mrf.mxu0 }
  0xf0   :  { %v216_v29 = vadd.f32 %v845_v21, %v679_v24 }
  0xf1   :  { %v207_v22 = vpop.f32.mrf.mxu0 }
  0xf2   :  { %v208_v27 = vadd.f32 %v679_v24, %v207_v22 }
  0xf3   :  { %v846_v23 = vpop.f32.mrf.mxu0 }
  0xf4   :  { %v219_v25 = vadd.f32 %v846_v23, %v679_v24 }
  0xf5   :  { %v210_v26 = vpop.f32.mrf.mxu0 }
  0xf6   :  { %v211_v28 = vadd.f32 %v679_v24, %v210_v26  ;;  %v271_v32 = vpack.c.bf16 %v219_v25, %v216_v29 }
  0xf7   :  { %v849_v30 = vpop.f32.mrf.mxu0 }
  0xf8   :  { %v270_v31 = vpack.c.bf16 %v211_v28, %v208_v27  ;;  %v232_v39 = vadd.f32 %v849_v30, %v679_v24  ;;  %v323_v4 = vsel %vm306_vm0, %v271_v32, 0 }
  0xf9   :  { %v223_v33 = vpop.f32.mrf.mxu0 }
  0xfa   :  { %891 = vmatprep.mubr.msk.bf16.mxu0 %vm306_vm0, %v270_v31  ;;  %v224_v37 = vadd.f32 %v679_v24, %v223_v33  ;;  %v320_v5 = vsel %vm306_vm0, %v270_v31, 0 }
  0xfb   :  { %v850_v34 = vpop.f32.mrf.mxu0  ;;  %892 = vmatmul.mubr.msk.bf16.vlgmr.msra.gmra.mxu0 %vm306_vm0, %v271_v32 }
  0xfc   :  { %v235_v35 = vadd.f32 %v850_v34, %v679_v24 }
  0xfd   :  { %v226_v36 = vpop.f32.mrf.mxu0 }
  0xfe   :  { %v227_v38 = vadd.f32 %v679_v24, %v226_v36  ;;  %v273_v42 = vpack.c.bf16 %v235_v35, %v232_v39 }
  0xff   :  { %v853_v40 = vpop.f32.mrf.mxu0 }
 0x100   :  { %v272_v41 = vpack.c.bf16 %v227_v38, %v224_v37  ;;  %v248_v49 = vadd.f32 %v853_v40, %v679_v24  ;;  %v329_v2 = vsel %vm306_vm0, %v273_v42, 0 }
 0x101   :  { %v239_v43 = vpop.f32.mrf.mxu0 }
 0x102   :  { %895 = vmatprep.mubr.msk.bf16.mxu0 %vm306_vm0, %v272_v41  ;;  %v240_v47 = vadd.f32 %v679_v24, %v239_v43  ;;  %v326_v3 = vsel %vm306_vm0, %v272_v41, 0 }
 0x103   :  { %v854_v44 = vpop.f32.mrf.mxu0  ;;  %896 = vmatmul.mubr.msk.bf16.gmra.mxu0 %vm306_vm0, %v273_v42 }
 0x104   :  { %v251_v45 = vadd.f32 %v854_v44, %v679_v24 }
 0x105   :  { %v242_v46 = vpop.f32.mrf.mxu0 }
 0x106   :  { %v243_v48 = vadd.f32 %v679_v24, %v242_v46  ;;  %v275_v52 = vpack.c.bf16 %v251_v45, %v248_v49 }
 0x107   :  { %v857_v50 = vpop.f32.mrf.mxu0 }
 0x108   :  { %v274_v51 = vpack.c.bf16 %v243_v48, %v240_v47  ;;  %v264_v55 = vadd.f32 %v857_v50, %v679_v24  ;;  %v335_v0 = vsel %vm306_vm0, %v275_v52, 0 }
 0x109   :  { %v255_v53 = vpop.f32.mrf.mxu0 }
 0x10a   :  { %899 = vmatprep.mubr.msk.bf16.mxu0 %vm306_vm0, %v274_v51  ;;  %v256_v58 = vadd.f32 %v679_v24, %v255_v53  ;;  %v332_v1 = vsel %vm306_vm0, %v274_v51, 0 }
 0x10b   :  { %v858_v54 = vpop.f32.mrf.mxu0  ;;  %900 = vmatmul.mubr.msk.bf16.gmra.mxu0 %vm306_vm0, %v275_v52 }
 0x10c   :  { %v267_v56 = vadd.f32 %v858_v54, %v679_v24 }
 0x10d   :  { %v258_v57 = vpop.f32.mrf.mxu0 }
 0x10e   :  { %v277_v59 = vpack.c.bf16 %v267_v56, %v264_v55  ;;  %v259_v60 = vadd.f32 %v679_v24, %v258_v57 }
 0x110   :  { %v276_v61 = vpack.c.bf16 %v259_v60, %v256_v58  ;;  %915 = vmatprep.subr.msk.bf16.mxu1 %vm306_vm0, %v277_v59  ;;  %v341_v62 = vsel %vm306_vm0, %v277_v59, 0 }
 0x111   :  { %860 = vmatpush3.bf16.xpose.msra.mxu1 %v341_v62 }
 0x112   :  { %916 = vmatprep.subr.msk.bf16.mxu1 %vm306_vm0, %v276_v61  ;;  %v338_v63 = vsel %vm306_vm0, %v276_v61, 0 }
 0x119   :  { %862 = vmatpush3.bf16.xpose.msra.mxu1 %v338_v63 }
 0x11a   :  { %917 = vmatprep.subr.msk.bf16.mxu1 %vm306_vm0, %v275_v52 }
 0x121   :  { %864 = vmatpush3.bf16.xpose.msra.mxu1 %v335_v0 }
 0x122   :  { %918 = vmatprep.subr.msk.bf16.mxu1 %vm306_vm0, %v274_v51 }
 0x129   :  { %866 = vmatpush3.bf16.xpose.msra.mxu1 %v332_v1 }
 0x12a   :  { %919 = vmatprep.subr.msk.bf16.mxu1 %vm306_vm0, %v273_v42 }
 0x131   :  { %868 = vmatpush3.bf16.xpose.msra.mxu1 %v329_v2 }
 0x132   :  { %920 = vmatprep.subr.msk.bf16.mxu1 %vm306_vm0, %v272_v41 }
 0x139   :  { %870 = vmatpush3.bf16.xpose.msra.mxu1 %v326_v3 }
 0x13a   :  { %921 = vmatprep.subr.msk.bf16.mxu1 %vm306_vm0, %v271_v32 }
 0x141   :  { %872 = vmatpush3.bf16.xpose.msra.mxu1 %v323_v4 }
 0x142   :  { %922 = vmatprep.subr.msk.bf16.mxu1 %vm306_vm0, %v270_v31 }
 0x149   :  { %874 = vmatpush3.bf16.xpose.msra.mxu1 %v320_v5 }
 0x14a   :  { %907 = vmatprep.subr.bf16.mxu1 %v1067_v9 }
 0x150   :  { %876 = vmatmul.mubr.msk.bf16.vlgmr.msra.gmra.mxu1 %vm306_vm0, %v948_v6 }
 0x151   :  { %911 = vmatpush3.bf16.msra.mxu1 %v1067_v9  ;;  %879 = vmatprep.mubr.msk.bf16.mxu1 %vm306_vm0, %v949_v7 }
 0x152   :  { %908 = vmatprep.subr.bf16.mxu1 %v1092_v17 }
 0x155   :  { %912 = vmatpush3.bf16.msra.mxu1 %v1092_v17 }
 0x156   :  { %909 = vmatprep.subr.bf16.mxu1 %v1096_v18 }
 0x158   :  { %880 = vmatmul.mubr.msk.bf16.gmra.mxu1 %vm306_vm0, %v950_v8 }
 0x159   :  { %913 = vmatpush3.bf16.msra.mxu1 %v1096_v18  ;;  %903 = vmatprep.mubr.msk.bf16.mxu1 %vm306_vm0, %v276_v61 }
 0x15a   :  { %910 = vmatprep.subr.bf16.mxu1 %v1100_v19 }
 0x15d   :  { %914 = vmatpush3.bf16.msra.mxu1 %v1100_v19 }
 0x160   :  { %904 = vmatmul.mubr.msk.bf16.vlgmr.msra.gmra.mxu1 %vm306_vm0, %v277_v59 }
 0x1bb   :  { %v893_v9 = vpop.f32.mrf.mxu0 }
 0x1bc   :  { %v750_v10 = vpack.c.bf16 %v893_v9, %v893_v9 }
 0x1bd   :  { %v514_v11 = vpop.f32.mrf.mxu0 }
 0x1be   :  { %644 = vst.msk [vmem:[%s1231_s6 + $0x8] sm:$0xf] %vm641_vm1, %v750_v10  ;;  %v748_v12 = vpack.c.bf16 %v514_v11, %v514_v11 }
 0x1bf   :  { %v894_v13 = vpop.f32.mrf.mxu0 }
 0x1c0   :  { %642 = vst.msk [vmem:[%s1231_s6] sm:$0xf] %vm641_vm1, %v748_v12  ;;  %v751_v14 = vpack.c.bf16 %v894_v13, %v894_v13 }
 0x1c1   :  { %v517_v15 = vpop.f32.mrf.mxu0 }
 0x1c2   :  { %645 = vst.msk [vmem:[%s1231_s6 + $0xc] sm:$0xf] %vm641_vm1, %v751_v14  ;;  %v749_v16 = vpack.c.bf16 %v517_v15, %v517_v15 }
 0x1c3   :  { %v897_v17 = vpop.f32.mrf.mxu0 }
 0x1c4   :  { %643 = vst.msk [vmem:[%s1231_s6 + $0x4] sm:$0xf] %vm641_vm1, %v749_v16  ;;  %v754_v18 = vpack.c.bf16 %v897_v17, %v897_v17 }
 0x1c5   :  { %v530_v19 = vpop.f32.mrf.mxu0 }
 0x1c6   :  { %648 = vst.msk [vmem:[%s1231_s6 + $0x18] sm:$0xf] %vm641_vm1, %v754_v18  ;;  %v752_v20 = vpack.c.bf16 %v530_v19, %v530_v19 }
 0x1c7   :  { %v898_v21 = vpop.f32.mrf.mxu0 }
 0x1c8   :  { %646 = vst.msk [vmem:[%s1231_s6 + $0x10] sm:$0xf] %vm641_vm1, %v752_v20  ;;  %v755_v22 = vpack.c.bf16 %v898_v21, %v898_v21 }
 0x1c9   :  { %v533_v23 = vpop.f32.mrf.mxu0 }
 0x1ca   :  { %649 = vst.msk [vmem:[%s1231_s6 + $0x1c] sm:$0xf] %vm641_vm1, %v755_v22  ;;  %v753_v24 = vpack.c.bf16 %v533_v23, %v533_v23 }
 0x1cb   :  { %v901_v25 = vpop.f32.mrf.mxu0 }
 0x1cc   :  { %647 = vst.msk [vmem:[%s1231_s6 + $0x14] sm:$0xf] %vm641_vm1, %v753_v24  ;;  %v758_v26 = vpack.c.bf16 %v901_v25, %v901_v25 }
 0x1cd   :  { %v546_v27 = vpop.f32.mrf.mxu0 }
 0x1ce   :  { %652 = vst.msk [vmem:[%s1231_s6 + $0x28] sm:$0xf] %vm641_vm1, %v758_v26  ;;  %v756_v28 = vpack.c.bf16 %v546_v27, %v546_v27 }
 0x1cf   :  { %v902_v29 = vpop.f32.mrf.mxu0 }
 0x1d0   :  { %650 = vst.msk [vmem:[%s1231_s6 + $0x20] sm:$0xf] %vm641_vm1, %v756_v28  ;;  %v759_v30 = vpack.c.bf16 %v902_v29, %v902_v29 }
 0x1d1   :  { %v549_v31 = vpop.f32.mrf.mxu0 }
 0x1d2   :  { %653 = vst.msk [vmem:[%s1231_s6 + $0x2c] sm:$0xf] %vm641_vm1, %v759_v30  ;;  %v757_v32 = vpack.c.bf16 %v549_v31, %v549_v31 }
 0x1d4   :  { %651 = vst.msk [vmem:[%s1231_s6 + $0x24] sm:$0xf] %vm641_vm1, %v757_v32 }
 0x210   :  { %v877_v33 = vpop.f32.mrf.mxu1 }
 0x212   :  { %v377_v34 = vpop.f32.mrf.mxu1 }
 0x214   :  { %v878_v35 = vpop.f32.mrf.mxu1 }
 0x215   :  { %v772_v36 = vpack.c.bf16 %v878_v35, %v877_v33 }
 0x216   :  { %v380_v37 = vpop.f32.mrf.mxu1 }
 0x217   :  { %784 = vst [vmem:[#allocation5 + $0x8] sm:$0xff] %v772_v36   ;;  %v767_v38 = vpack.c.bf16 %v380_v37, %v377_v34 }
 0x218   :  { %v881_v39 = vpop.f32.mrf.mxu1 }
 0x219   :  { %768 = vst [vmem:[#allocation5] sm:$0xff] %v767_v38  }
 0x21a   :  { %v393_v40 = vpop.f32.mrf.mxu1 }
 0x21c   :  { %v882_v41 = vpop.f32.mrf.mxu1 }
 0x21d   :  { %v782_v42 = vpack.c.bf16 %v882_v41, %v881_v39 }
 0x21e   :  { %v396_v43 = vpop.f32.mrf.mxu1 }
 0x21f   :  { %786 = vst [vmem:[#allocation5 + $0x18] sm:$0xff] %v782_v42   ;;  %v777_v44 = vpack.c.bf16 %v396_v43, %v393_v40 }
 0x220   :  { %v905_v45 = vpop.f32.mrf.mxu1 }
 0x221   :  { %785 = vst [vmem:[#allocation5 + $0x10] sm:$0xff] %v777_v44   ;;  %v762_v46 = vpack.c.bf16 %v905_v45, %v905_v45 }
 0x222   :  { %v562_v47 = vpop.f32.mrf.mxu1 }
 0x223   :  { %982 = shalt.err (!%p979_p9)
}
 0x224   :  { %669 = dma.vmem_to_hbm [thread:$0]  %s664_s17, 512, %s1230_s5, [#allocation4], %s996_s24, %s996_s24, %s997_s25   ;;  %v760_v48 = vpack.c.bf16 %v562_v47, %v562_v47  ;;  %v906_v49 = vpop.f32.mrf.mxu1 }
 0x225   :  { %656 = vst.msk [vmem:[%s1231_s6 + $0x38] sm:$0xf] %vm641_vm1, %v762_v46  ;;  %v763_v50 = vpack.c.bf16 %v906_v49, %v906_v49 }
 0x226   :  { %654 = vst.msk [vmem:[%s1231_s6 + $0x30] sm:$0xf] %vm641_vm1, %v760_v48  ;;  %v565_v51 = vpop.f32.mrf.mxu1 }
 0x227   :  { %657 = vst.msk [vmem:[%s1231_s6 + $0x3c] sm:$0xf] %vm641_vm1, %v763_v50  ;;  %v761_v52 = vpack.c.bf16 %v565_v51, %v565_v51 }
 0x229   :  { %655 = vst.msk [vmem:[%s1231_s6 + $0x34] sm:$0xf] %vm641_vm1, %v761_v52 }
 0x22a   :  { %993 = dma.done.wait [#allocation4], 512  }
 0x22b   :  { %994 = vsyncadd [#allocation4], 4294966784 }
 0x22c   :  { %677 = vsyncpa [#allocation3], 1 }
 0x22d   :  { %678 = vsyncpa [#allocation4], 1 }

</bundles_post_ra>
